<compile_context>
chip_gen: v7x
topology: tpu7x:2x2x1
jax: 0.10.0
libtpu: 0.0.40
codegen_flags: <defaults>
</compile_context>

<pallas_src>
import math

import jax
import jax.numpy as jnp
from jax.experimental import pallas as pl
from jax.experimental.pallas import tpu as pltpu


def _single_model_kernel(x_ref, w_ref, const_ref, out_ref):
    """Fused (identity-encoder) SingleModel forward: one MXU dot.

    x_ref     : (B, L*C)   f32  inputs, batch on the sublane axis
    w_ref     : (L*C, P*3) f32  whole affine chain folded into one weight
    const_ref : (1, P*3)   f32  positional embedding + all biases, pre-folded
    out_ref   : (B, P*3)   f32
    """
    out_ref[...] = (
        jnp.dot(x_ref[...], w_ref[...], preferred_element_type=jnp.float32)
        + const_ref[...]
    )


def fold_params(params, seq_len, pred_len):
    """Fold the identity-encoder linear chain into (L*C, P*3) weight + const.

    Done ONCE outside the jit/per-call path (exact f32 algebra, O(L*C*P) sized
    result, independent of batch size).
    """
    conv_w = params["conv_w"]          # (D, C, 3)  TokenEmbedding.tokenConv.weight
    pe = params["pe"]                  # (max_len, D)
    pred_w = params["pred_w"]          # (L+P, L)
    pred_b = params["pred_b"]          # (L+P,)
    dec_w = params["dec_w"]            # (3, D)
    dec_b = params["dec_b"]            # (3,)
    L, P = seq_len, pred_len
    D, C, _ = conv_w.shape

    wdec = dec_w.T                                                    # (D, 3)
    # Conv tap k (acting on x[(t + k - 1) mod L]) folded through the decoder.
    wc = jnp.einsum('dck,dj->kcj', conv_w, wdec)                      # (3, C, 3)

    wpred_p = pred_w[L:]                                              # (P, L) rows that reach the output
    # Circular shift of each tap folded into predict_linear's columns:
    # shifted[k][s, m] = wpred_p[s, (m - (k - 1)) mod L].
    wp_shift = jnp.stack(
        [jnp.roll(wpred_p, k - 1, axis=1) for k in range(3)])         # (3, P, L)

    # W_full[(m, c), (s, j)] = sum_k shifted[k][s, m] * wc[k, c, j]
    w_full = jnp.einsum('kpm,kcj->mcpj', wp_shift, wc).reshape(L * C, P * 3)

    # Positional embedding + both biases collapse into one constant row.
    pe_dec = pe[:L] @ wdec                                            # (L, 3)
    const = (wpred_p @ pe_dec
             + pred_b[L:][:, None] * jnp.sum(wdec, axis=0)[None, :]
             + dec_b[None, :])                                        # (P, 3)
    return w_full, const.reshape(1, P * 3)


def single_model_forward(x, w_full, const_row, *, pred_len):
    """SingleModel.forward(x, x_mark, x_fund) for the identity-encoder path.

    x: (B, seq_len, enc_in) f32.  Returns (B, pred_len, 3) f32.
    """
    B, L, C = x.shape
    P = pred_len
    x2d = x.reshape(B, L * C)        # contiguous reshape: free, no transpose

    # Everything fits in a single (8/16,128) tile each, so it is whole-array
    # VMEM resident and a single grid-less invocation (no grid / pipelining).
    y = pl.pallas_call(
        _single_model_kernel,
        out_shape=jax.ShapeDtypeStruct((B, P * 3), jnp.float32),
        in_specs=[pl.BlockSpec(memory_space=pltpu.MemorySpace.VMEM)] * 3,
        out_specs=pl.BlockSpec(memory_space=pltpu.MemorySpace.VMEM),
    )(x2d, w_full, const_row)                                         # (B, P*3)

    return y.reshape(B, P, 3)        # contiguous reshape: free


def init_params(key, enc_in, d_model, seq_len, pred_len, max_len=5000):
    """Parameters in their canonical PyTorch layouts."""
    C, D, L, P = enc_in, d_model, seq_len, pred_len
    kc, kpw, kpb, kdw, kdb = jax.random.split(key, 5)

    # TokenEmbedding.tokenConv.weight (D, C, 3): kaiming_normal_(fan_in, leaky_relu).
    fan_in = C * 3
    gain = math.sqrt(2.0 / (1.0 + 0.01 ** 2))
    conv_w = (gain / math.sqrt(fan_in)) * jax.random.normal(kc, (D, C, 3), jnp.float32)

    # PositionalEmbedding buffer.
    pos = jnp.arange(max_len, dtype=jnp.float32)[:, None]
    div = jnp.exp(jnp.arange(0, D, 2, dtype=jnp.float32) * -(math.log(10000.0) / D))
    pe = jnp.zeros((max_len, D), jnp.float32)
    pe = pe.at[:, 0::2].set(jnp.sin(pos * div))
    pe = pe.at[:, 1::2].set(jnp.cos(pos * div))

    # predict_linear: Linear(L -> L+P), torch default uniform init.
    bound = 1.0 / math.sqrt(L)
    pred_w = jax.random.uniform(kpw, (L + P, L), jnp.float32, -bound, bound)
    pred_b = jax.random.uniform(kpb, (L + P,), jnp.float32, -bound, bound)

    # decoder: Linear(d_model -> 3).
    bound = 1.0 / math.sqrt(D)
    dec_w = jax.random.uniform(kdw, (3, D), jnp.float32, -bound, bound)
    dec_b = jax.random.uniform(kdb, (3,), jnp.float32, -bound, bound)

    return dict(conv_w=conv_w, pe=pe, pred_w=pred_w, pred_b=pred_b,
                dec_w=dec_w, dec_b=dec_b)


def reference_forward(x, params, pred_len):
    """Pure-JAX f32 reference following the PyTorch op order (no fusion).

    The circular Conv1d is written with explicit circular padding and the raw
    (D, C, 3) conv weight, so it does not share the kernel's weight-folding.
    """
    conv_w, pe, pred_w, pred_b, dec_w, dec_b = (
        params["conv_w"], params["pe"], params["pred_w"],
        params["pred_b"], params["dec_w"], params["dec_b"])
    B, L, C = x.shape
    D = conv_w.shape[0]
    # TokenEmbedding: Conv1d(C->D, k=3, padding=1, padding_mode='circular', bias=False)
    # applied to x.permute(0, 2, 1) (torch cross-correlation).
    xp = jnp.concatenate([x[:, -1:, :], x, x[:, :1, :]], axis=1)     # circular pad on seq
    emb = jnp.zeros((B, L, D), jnp.float32)
    for k in range(3):
        emb = emb + jnp.einsum('blc,dc->bld', xp[:, k:k + L, :], conv_w[:, :, k])
    emb = emb + pe[:L][None]                                         # PositionalEmbedding; dropout=id
    h = jnp.swapaxes(emb, 1, 2)                                      # b l d -> b d l
    h = jnp.einsum('bdl,sl->bds', h, pred_w) + pred_b[None, None, :] # predict_linear
    # encoder1 / encoder2: identity (see TODO at top of file)
    h = jnp.swapaxes(h, 1, 2)                                        # b d s -> b s d
    y = jnp.einsum('bsd,kd->bsk', h, dec_w) + dec_b[None, None, :]   # decoder
    return y[:, -pred_len:, :]


if __name__ == "__main__":
    B, L, P, C, D = 2, 16, 8, 4, 32   # batch, seq_len, pred_len, enc_in, d_model
    key = jax.random.PRNGKey(0)
    kx, kp = jax.random.split(key)
    x = jax.random.normal(kx, (B, L, C), jnp.float32)   # x_mark / x_fund are unused by forward
    params = init_params(kp, C, D, L, P)

    # One-time fold outside the jit/per-call path; kernel only sees ready tensors.
    w_full, const_row = fold_params(params, L, P)
    w_full = jax.block_until_ready(w_full)

    fwd = jax.jit(lambda xx, wf, cc: single_model_forward(xx, wf, cc, pred_len=P))
    y = jax.block_until_ready(fwd(x, w_full, const_row))
    y_ref = reference_forward(x, params, P)

    assert y.shape == (B, P, 3), y.shape
    # f32 end-to-end; remaining deviation is only the TPU MXU's default matmul
    # precision (shared by the jnp reference), so a 1e-2 bound is comfortable.
    assert jnp.allclose(y, y_ref, rtol=1e-2, atol=1e-2), \
        f"mismatch vs pure-JAX reference, max abs err = {float(jnp.max(jnp.abs(y - y_ref)))}"
    print("KERNEL_OK")
</pallas_src>

<mosaic_0001>
module attributes {stable_mosaic.version = 11 : i64} {
  func.func @_single_model_kernel(%arg0: memref<2x64xf32, #tpu.memory_space<vmem>>, %arg1: memref<64x24xf32, #tpu.memory_space<vmem>>, %arg2: memref<1x24xf32, #tpu.memory_space<vmem>>, %arg3: memref<2x24xf32, #tpu.memory_space<vmem>>) attributes {dimension_semantics = [], scalar_prefetch = 0 : i64, scratch_operands = 0 : i64, tpu.core_type = #tpu.core_type<tc>} {
    %c0 = arith.constant 0 : index
    %c0_0 = arith.constant 0 : index
    %0 = vector.load %arg0[%c0, %c0_0] : memref<2x64xf32, #tpu.memory_space<vmem>>, vector<2x64xf32>
    %c0_1 = arith.constant 0 : index
    %c0_2 = arith.constant 0 : index
    %1 = vector.load %arg1[%c0_1, %c0_2] : memref<64x24xf32, #tpu.memory_space<vmem>>, vector<64x24xf32>
    %cst = arith.constant dense<0.000000e+00> : vector<2x24xf32>
    %2 = tpu.matmul %0, %1, %cst {dimension_numbers = #tpu.dot_dimension_numbers<[1], [0], [0], [1], [0, 0, 1, 1], [], []>} : vector<2x64xf32>, vector<64x24xf32>, vector<2x24xf32> -> vector<2x24xf32>
    %c0_3 = arith.constant 0 : index
    %c0_4 = arith.constant 0 : index
    %3 = vector.load %arg2[%c0_3, %c0_4] : memref<1x24xf32, #tpu.memory_space<vmem>>, vector<1x24xf32>
    %4 = vector.broadcast %3 : vector<1x24xf32> to vector<2x24xf32>
    %5 = arith.addf %2, %4 : vector<2x24xf32>
    %c0_5 = arith.constant 0 : index
    %c0_6 = arith.constant 0 : index
    %6 = vector.load %arg3[%c0_5, %c0_6] : memref<2x24xf32, #tpu.memory_space<vmem>>, vector<2x24xf32>
    tpu.vector_store %arg3[%c0_5, %c0_6], %5 {strides = array<i32>} : memref<2x24xf32, #tpu.memory_space<vmem>>, vector<2x24xf32>,
    return
  }
}

</mosaic_0001>

<bundles_post_ra>
// kernel: _lambda_.1
= control target key start
LH: loop header
LB: loop body
LE: loop exit
PB: predicated region body
PF: predicated region fallthrough
CT: control target
= control target key end

     0   :  { %v155_v0 = vmov 0.0|0.0   ;;  %vm156_vm0 = vmmov 0   ;;  %v157_v4 = vmov 0.0   ;;  %vm30_vm1 = vcmask 523264   ;;  %s211_s1 = inlined_call_operand.vmem [shape: f32[64,24], index: 1, kind: input, shape index: {}]   ;;  %s212_s0 = inlined_call_operand.vmem [shape: f32[2,64], index: 0, kind: input, shape index: {}]   ;;  %s213_s2 = inlined_call_operand.vmem [shape: f32[1,24], index: 2, kind: input, shape index: {}]   ;;  %s214_s3 = inlined_call_operand.vmem [shape: f32[2,24], index: 3, kind: output, shape index: {}]  }
   0x1   :  { %140 = vmatprep.subr.bf16.mxu0 %v155_v0  ;;  %v15_v1 = vld [vmem:[%s211_s1] sm:$0xff]  ;;  %v16_v2 = vld [vmem:[%s211_s1 + $0x8] sm:$0xff]  ;;  %v17_v3 = vld [vmem:[%s211_s1 + $0x10] sm:$0xff]  ;;  %137 = vmatprep.mubr.msk.f32.mxu0 %vm156_vm0, %v157_v4  ;;  %vm104_vm2 = vcmask 189440  }
   0x2   :  { %v141_v5 = vpack.c.bf16 %v16_v2, %v15_v1  ;;  %v18_v6 = vld [vmem:[%s211_s1 + $0x18] sm:$0xff]  ;;  %v19_v8 = vld [vmem:[%s211_s1 + $0x20] sm:$0xff]  ;;  %v20_v9 = vld [vmem:[%s211_s1 + $0x28] sm:$0xff] }
   0x3   :  { %v144_v7 = vpack.c.bf16 %v18_v6, %v17_v3  ;;  %v147_v10 = vpack.c.bf16 %v20_v9, %v19_v8  ;;  %v21_v11 = vld [vmem:[%s211_s1 + $0x30] sm:$0xff]  ;;  %v22_v12 = vld [vmem:[%s211_s1 + $0x38] sm:$0xff]  ;;  %v14_v14 = vld [vmem:[%s212_s0] sm:$0x3] }
   0x4   :  { %142 = vmatpush3.bf16.msra.mxu0 %v141_v5  ;;  %v150_v13 = vpack.c.bf16 %v22_v12, %v21_v11  ;;  %v110_v15 = vld [vmem:[%s213_s2] ss:$0 sm:$0xff] }
   0x5   :  { %143 = vmatprep.subr.bf16.mxu0 %v155_v0 }
   0x8   :  { %145 = vmatpush3.bf16.msra.mxu0 %v144_v7 }
   0x9   :  { %146 = vmatprep.subr.bf16.mxu0 %v155_v0 }
   0xc   :  { %148 = vmatpush3.bf16.msra.mxu0 %v147_v10 }
   0xd   :  { %149 = vmatprep.subr.bf16.mxu0 %v155_v0 }
  0x10   :  { %151 = vmatpush3.bf16.msra.mxu0 %v150_v13 }
  0x13   :  { %138 = vmatmul.mubr.msk.f32.vlgmr.msra.gmra.mrb[0].mxu0 %vm30_vm1, %v14_v14 }
  0xe6   :  { %v100_v16 = vpop.f32.mrb[0].mxu0 }
  0xe7   :  { %v101_v17 = vadd.f32 %v110_v15, %v100_v16  ;;  %v139_v18 = vpop.f32.mrb[1].mxu0 }
  0xe9   :  { %105 = vst.msk [vmem:[%s214_s3] sm:$0x3] %vm104_vm2, %v101_v17 }

</bundles_post_ra>
